<compile_context>
chip_gen: v7x
topology: tpu7x:2x2x1
jax: 0.10.0
libtpu: 0.0.40
codegen_flags: <defaults>
</compile_context>

<pallas_src>
import jax
import jax.numpy as jnp
from jax.experimental import pallas as pl
from jax.experimental.pallas import tpu as pltpu


def _exp_layer_kernel(x_ref, a_ref, c_ref, out_ref):
    # x_ref:   (2, TN)    point coordinates, points on the lane axis
    # a_ref:   (L, 8)     expanded-quadratic coefficients (cols 4..7 are zero)
    # c_ref:   (L, 1)     constant term (sign already folded in)
    # out_ref: (L, TN)
    x = x_ref[...]                                      # (2, TN)
    xsq = x * x                                         # 2 VPU muls per point
    # Feature rows: [x0^2, x1^2, x0, x1, x0^2, x1^2, x0, x1]  (K padded to 8)
    feats = jnp.concatenate([xsq, x, xsq, x], axis=0)   # (8, TN)
    e = jnp.dot(a_ref[...], feats,
                preferred_element_type=jnp.float32,
                precision=jax.lax.Precision.HIGHEST)    # MXU: (L, TN)
    out_ref[...] = jnp.exp(e + c_ref[...]).astype(out_ref.dtype)


def _exp_layer_batched(x_t, a, c, *, lnum, n_pad, tile_n):
    cost = pl.CostEstimate(
        flops=int((2 * 8 + 1) * lnum * n_pad + 2 * n_pad),
        transcendentals=int(lnum * n_pad),
        bytes_accessed=int(4 * (2 * n_pad + lnum * n_pad + lnum * 9)),
    )
    return pl.pallas_call(
        _exp_layer_kernel,
        out_shape=jax.ShapeDtypeStruct((lnum, n_pad), jnp.float32),
        grid_spec=pltpu.PrefetchScalarGridSpec(
            num_scalar_prefetch=0,
            grid=(n_pad // tile_n,),
            in_specs=[
                pl.BlockSpec((2, tile_n), lambda i: (0, i)),   # points tile (lane-dense)
                pl.BlockSpec((lnum, 8), lambda i: (0, 0)),     # coefficients, resident
                pl.BlockSpec((lnum, 1), lambda i: (0, 0)),     # constant, resident
            ],
            out_specs=pl.BlockSpec((lnum, tile_n), lambda i: (0, i)),
        ),
        compiler_params=pltpu.CompilerParams(
            dimension_semantics=("parallel",)),
        cost_estimate=cost,
    )(x_t, a, c)


def _round_up(x, m):
    return ((x + m - 1) // m) * m


def _choose_tiling(total, max_tile_n):
    """Pick (tile_n, n_pad): tile_n % 128 == 0, >=2 grid steps when possible,
    tile_n <= max_tile_n, padding bounded by ~127 lanes per grid step."""
    max_tile_n = max(128, (max_tile_n // 128) * 128)
    total_pad = _round_up(max(total, 1), 128)
    if total_pad <= 128:
        return 128, 128
    steps = max(2, pl.cdiv(total_pad, max_tile_n))
    tile_n = _round_up(pl.cdiv(total_pad, steps), 128)
    return tile_n, steps * tile_n


def exponential_layer(pd_points, mu, sg, *, max_tile_n=32768, return_packed=False):
    """pd_points: list of (N_b, 2) arrays; mu, sg: (1, 2, lnum).

    Default: list of (N_b, lnum) arrays (same semantics as the PyTorch module).
    return_packed=True: returns (packed, offsets) where packed is the lane-dense
    (lnum, total) slab (no transpose, no per-diagram slicing) and offsets[i]
    marks the column where diagram i starts.
    """
    lnum = int(mu.shape[-1])
    sizes = [int(x.shape[0]) for x in pd_points]
    total = sum(sizes)

    tile_n, n_pad = _choose_tiling(total, max_tile_n)

    # Batch the ragged list into a single lane-major slab (2, N_pad).
    xs = [jnp.asarray(x, jnp.float32).reshape(-1, 2) for x in pd_points]
    x_all = jnp.concatenate(xs, axis=0) if xs else jnp.zeros((0, 2), jnp.float32)
    x_t = jnp.zeros((2, n_pad), jnp.float32).at[:, :total].set(x_all.T)

    # Expanded quadratic, sign folded in:
    #   -(s0*(x0-m0)^2 + s1*(x1-m1)^2)
    #     = (-s0)*x0^2 + (-s1)*x1^2 + (2*s0*m0)*x0 + (2*s1*m1)*x1 - (s0*m0^2 + s1*m1^2)
    mu0 = mu[0, 0, :].astype(jnp.float32)
    mu1 = mu[0, 1, :].astype(jnp.float32)
    s0 = jnp.square(sg[0, 0, :].astype(jnp.float32))
    s1 = jnp.square(sg[0, 1, :].astype(jnp.float32))
    z = jnp.zeros_like(s0)
    a = jnp.stack([-s0, -s1, 2.0 * s0 * mu0, 2.0 * s1 * mu1, z, z, z, z],
                  axis=1)                                       # (lnum, 8)
    c = (-(s0 * mu0 * mu0 + s1 * mu1 * mu1))[:, None]           # (lnum, 1)

    out_t = _exp_layer_batched(x_t, a, c, lnum=lnum, n_pad=n_pad, tile_n=tile_n)

    if return_packed:
        offsets = [0]
        for n in sizes:
            offsets.append(offsets[-1] + n)
        return out_t[:, :total], offsets

    # Per-diagram slices from the lane-dense slab; only real points get transposed.
    results = []
    off = 0
    for n in sizes:
        results.append(out_t[:, off:off + n].T)                 # (N_b, lnum)
        off += n
    return results


def _reference_single(x, mu, sg):
    # Pure-JAX mirror of the PyTorch forward for one diagram.
    inp = x[:, :, None]                                  # (N, 2, 1)
    out = jnp.square(inp - mu) * jnp.square(sg)          # (N, 2, lnum)
    out = jnp.sum(-out, axis=1)                          # (N, lnum)
    return jnp.exp(out)


if __name__ == "__main__":
    key = jax.random.PRNGKey(0)
    k_mu, k_sg, k_x0, k_x1 = jax.random.split(key, 4)

    lnum = 25   # module default

    # Parameters (match torch.rand shapes (1, 2, lnum), U[0,1)).
    mu = jax.random.uniform(k_mu, (1, 2, lnum), jnp.float32)
    sg = jax.random.uniform(k_sg, (1, 2, lnum), jnp.float32)

    # A "batch" of 2 persistence diagrams with different point counts.
    x0 = jax.random.uniform(k_x0, (40, 2), jnp.float32)
    x1 = jax.random.uniform(k_x1, (24, 2), jnp.float32)
    pd_points = [x0, x1]

    # List API (PyTorch semantics).
    outs = exponential_layer(pd_points, mu, sg)
    outs = [jax.block_until_ready(o) for o in outs]

    ok = True
    for x, o in zip(pd_points, outs):
        ref = _reference_single(x, mu, sg)
        ok = ok and (o.shape == (x.shape[0], lnum))
        ok = ok and bool(jnp.allclose(o, ref, rtol=1e-5, atol=1e-5))

    # Packed (transpose-free) API.
    packed, offsets = exponential_layer(pd_points, mu, sg, return_packed=True)
    packed = jax.block_until_ready(packed)
    ref_packed = jnp.concatenate(
        [_reference_single(x, mu, sg) for x in pd_points], axis=0).T
    ok = ok and (packed.shape == (lnum, sum(x.shape[0] for x in pd_points)))
    ok = ok and (offsets == [0, 40, 64])
    ok = ok and bool(jnp.allclose(packed, ref_packed, rtol=1e-5, atol=1e-5))

    if ok:
        print("KERNEL_OK")
</pallas_src>

<mosaic_0001>
module attributes {stable_mosaic.version = 11 : i64} {
  func.func @_exp_layer_kernel(%arg0: i32, %arg1: memref<2x128xf32, #tpu.memory_space<vmem>>, %arg2: memref<25x8xf32, #tpu.memory_space<vmem>>, %arg3: memref<25x1xf32, #tpu.memory_space<vmem>>, %arg4: memref<25x128xf32, #tpu.memory_space<vmem>>) attributes {dimension_semantics = [#tpu.dimension_semantics<parallel>], iteration_bounds = array<i64: 1>, scalar_prefetch = 0 : i64, scratch_operands = 0 : i64, tpu.core_type = #tpu.core_type<tc>, window_params = [{transform_indices = @transform_0, window_bounds = array<i64: 2, 128>}, {pipeline_mode = #tpu.pipeline_mode<synchronous>, transform_indices = @transform_1, window_bounds = array<i64: 25, 8>}, {pipeline_mode = #tpu.pipeline_mode<synchronous>, transform_indices = @transform_2, window_bounds = array<i64: 25, 1>}, {transform_indices = @transform_3, window_bounds = array<i64: 25, 128>}]} {
    %c0 = arith.constant 0 : index
    %c0_0 = arith.constant 0 : index
    %0 = vector.load %arg1[%c0, %c0_0] : memref<2x128xf32, #tpu.memory_space<vmem>>, vector<2x128xf32>
    %1 = arith.mulf %0, %0 : vector<2x128xf32>
    %2 = tpu.concatenate %1, %0, %1, %0 in 0 : vector<2x128xf32>, vector<2x128xf32>, vector<2x128xf32>, vector<2x128xf32> -> vector<8x128xf32>
    %c0_1 = arith.constant 0 : index
    %c0_2 = arith.constant 0 : index
    %3 = vector.load %arg2[%c0_1, %c0_2] : memref<25x8xf32, #tpu.memory_space<vmem>>, vector<25x8xf32>
    %cst = arith.constant dense<0.000000e+00> : vector<25x128xf32>
    %4 = tpu.matmul %3, %2, %cst {dimension_numbers = #tpu.dot_dimension_numbers<[1], [0], [0], [1], [0, 0, 1, 1], [], []>, precision = #tpu.contract_precision<fp32>} : vector<25x8xf32>, vector<8x128xf32>, vector<25x128xf32> -> vector<25x128xf32>
    %c0_3 = arith.constant 0 : index
    %c0_4 = arith.constant 0 : index
    %5 = vector.load %arg3[%c0_3, %c0_4] : memref<25x1xf32, #tpu.memory_space<vmem>>, vector<25x1xf32>
    %6 = vector.broadcast %5 : vector<25x1xf32> to vector<25x128xf32>
    %7 = arith.addf %4, %6 : vector<25x128xf32>
    %8 = math.exp %7 : vector<25x128xf32>
    %c0_5 = arith.constant 0 : index
    %c0_6 = arith.constant 0 : index
    %9 = vector.load %arg4[%c0_5, %c0_6] : memref<25x128xf32, #tpu.memory_space<vmem>>, vector<25x128xf32>
    tpu.vector_store %arg4[%c0_5, %c0_6], %8 {strides = array<i32>} : memref<25x128xf32, #tpu.memory_space<vmem>>, vector<25x128xf32>,
    return
  }
  func.func @transform_0(%arg0: i32) -> (i32, i32) {
    %c0_i32 = arith.constant 0 : i32
    %c0_i32_0 = arith.constant 0 : i32
    return %c0_i32, %arg0 : i32, i32
  }
  func.func @transform_1(%arg0: i32) -> (i32, i32) {
    %c0_i32 = arith.constant 0 : i32
    %c0_i32_0 = arith.constant 0 : i32
    %c0_i32_1 = arith.constant 0 : i32
    return %c0_i32, %c0_i32_0 : i32, i32
  }
  func.func @transform_2(%arg0: i32) -> (i32, i32) {
    %c0_i32 = arith.constant 0 : i32
    %c0_i32_0 = arith.constant 0 : i32
    %c0_i32_1 = arith.constant 0 : i32
    return %c0_i32, %c0_i32_0 : i32, i32
  }
  func.func @transform_3(%arg0: i32) -> (i32, i32) {
    %c0_i32 = arith.constant 0 : i32
    %c0_i32_0 = arith.constant 0 : i32
    return %c0_i32, %arg0 : i32, i32
  }
}

</mosaic_0001>

<bundles_post_ra>
// kernel: tpu_custom_call.1
= control target key start
LH: loop header
LB: loop body
LE: loop exit
PB: predicated region body
PF: predicated region fallthrough
CT: control target
= control target key end

     0   :  { %vm25_vm0 = vcmask 1041408   ;;  %vm27_vm1 = vcmask 1043456   ;;  %vm29_vm2 = vcmask 1045504   ;;  %vm59_vm3 = vcmask 64512   ;;  %s903_s0 = inlined_call_operand.vmem [shape: f32[2,128], index: 0, kind: input, shape index: {}]   ;;  %s904_s1 = inlined_call_operand.vmem [shape: f32[25,8], index: 1, kind: input, shape index: {}]   ;;  %s905_s2 = inlined_call_operand.vmem [shape: f32[25,1], index: 2, kind: input, shape index: {}]   ;;  %s906_s3 = inlined_call_operand.hbm [shape: f32[25,128], index: 3, kind: output, shape index: {}]  }
   0x1   :  { %v15_v0 = vld [vmem:[%s903_s0] sm:$0x3]  ;;  %v32_v5 = vld [vmem:[%s904_s1 + $0x8] sm:$0xff]  ;;  %v33_v6 = vld [vmem:[%s904_s1 + $0x10] sm:$0xff]  ;;  %v815_v16 = vmov 0  }
   0x2   :  { %v31_v1 = vld [vmem:[%s904_s1] sm:$0xff]  ;;  %v16_v2 = vmul.f32 %v15_v0, %v15_v0  ;;  %v18_v3 = vrot.slane %v15_v0, 6  ;;  %v23_v4 = vrot.slane %v15_v0, 2  ;;  %v64_v9 = vsel %vm59_vm3, %v32_v5, 0  ;;  %v34_v11 = vld [vmem:[%s904_s1 + $0x18] sm:$0x1]  ;;  %781 = vset.pattern.permute.xlu0 %v815_v16  ;;  %782 = vset.pattern.permute.xlu1 %v815_v16 }
   0x3   :  { %v35_v7 = vld [vmem:[%s905_s2] sm:$0xff]  ;;  %v61_v8 = vsel %vm59_vm3, %v31_v1, 0  ;;  %v67_v10 = vsel %vm59_vm3, %v33_v6, 0  ;;  %v863_v15 = vand.u32 4294901760, %v64_v9  ;;  %v37_v17 = vld [vmem:[%s905_s2 + $0x10] sm:$0xff]  ;;  %v70_v19 = vsel %vm59_vm3, %v34_v11, 0 }
   0x4   :  { %v21_v12 = vrot.slane %v16_v2, 4  ;;  %v26_v13 = vsel %vm25_vm0, %v16_v2, %v18_v3  ;;  %v861_v14 = vand.u32 4294901760, %v61_v8  ;;  %v868_v18 = vand.u32 4294901760, %v67_v10  ;;  %41 = vperm.xlu0 %781, %v35_v7   ;;  %51 = vperm.xlu1 %782, %v37_v17  }
   0x5   :  { %8 = vsyncpa [#allocation3], 0  ;;  %v149_v22 = vsub.f32 %v64_v9, %v863_v15  ;;  %v168_v23 = vand.u32 4294901760, %v70_v19  ;;  %v36_v24 = vld [vmem:[%s905_s2 + $0x8] sm:$0xff]  ;;  %v38_v25 = vld [vmem:[%s905_s2 + $0x18] sm:$0x1] }
   0x6   :  { %v28_v20 = vsel %vm27_vm1, %v26_v13, %v21_v12  ;;  %v139_v21 = vsub.f32 %v61_v8, %v861_v14  ;;  %v159_v27 = vsub.f32 %v67_v10, %v868_v18  ;;  %s816_s2 = smov [#allocation2]  }
   0x7   :  { %v30_v26 = vsel %vm29_vm2, %v28_v20, %v23_v4  ;;  %v150_v30 = vand.u32 4294901760, %v149_v22  ;;  %v169_v31 = vsub.f32 %v70_v19, %v168_v23  ;;  %s664_s28 = sshll.u32 %s816_s2, 4  ;;  %s665_s28 = int_to_ptr.vmem [resolvable:$true] %s664_s28 }
   0x8   :  { %v73_v28 = vand.u32 4294901760, %v30_v26  ;;  %v140_v29 = vand.u32 4294901760, %v139_v21  ;;  %v160_v32 = vand.u32 4294901760, %v159_v27  ;;  %46 = vperm.xlu0 %781, %v36_v24   ;;  %56 = vperm.xlu1 %782, %v38_v25   ;;  %s791_s29 = scalar_lea.vmem %s665_s28, 512  ;;  %p796_p1 = scmp.lt.s32.totalorder %s665_s28, %s665_s28 }
   0x9   :  { %v151_v34 = vsub.f32 %v149_v22, %v150_v30  ;;  %v170_v35 = vand.u32 4294901760, %v169_v31  ;;  %p792_p0 = scmp.ne.s32.totalorder %s665_s28, %s791_s29  ;;  %p797_p2 = scmp.lt.s32.totalorder %s791_s29, %s791_s29 }
   0xa   :  { %729 = vmatprep.subr.mxu0 %v73_v28  ;;  %731 = vmatprep.mubr.f32.mxu0 %v140_v29  ;;  %v141_v33 = vsub.f32 %v139_v21, %v140_v29  ;;  %v180_v36 = vsub.f32 %v30_v26, %v73_v28  ;;  %v161_v37 = vsub.f32 %v159_v27, %v160_v32 }
   0xb   :  { %730 = vmatpush3.msra.mxu0 %v73_v28  ;;  %705 = vmatprep.subr.mxu1 %v73_v28  ;;  %v152_v39 = vand.u32 4294901760, %v151_v34  ;;  %v171_v40 = vsub.f32 %v169_v31, %v170_v35  ;;  %p798_p3 = por %p797_p2, %p796_p1 }
   0xc   :  { %732 = vmatmul.mubr.f32.vlgmr.msra.gmra.mrb[0].mxu0 %v150_v30  ;;  %706 = vmatpush3.msra.mxu1 %v73_v28  ;;  %v142_v38 = vand.u32 4294901760, %v141_v33  ;;  %v181_v41 = vand.u32 4294901760, %v180_v36  ;;  %v162_v42 = vand.u32 4294901760, %v161_v37 }
   0xd   :  { %734 = vmatprep.mubr.f32.mxu0 %v160_v32  ;;  %v172_v44 = vand.u32 4294901760, %v171_v40  ;;  %p799_p4 = pnand %p798_p3, %p792_p0 }
   0xe   :  { %707 = vmatprep.mubr.f32.mxu1 %v142_v38  ;;  %v182_v43 = vsub.f32 %v180_v36, %v181_v41  ;;  %737 = vmatprep.subr.mxu0 %v181_v41 }
   0xf   :  { %708 = vmatmul.mubr.f32.vlgmr.msra.gmra.mrb[0].mxu1 %v152_v39  ;;  %738 = vmatpush3.msra.mxu0 %v181_v41 }
  0x10   :  { %735 = vmatmul.mubr.f32.gmra.mrb[2].mxu0 %v170_v35  ;;  %710 = vmatprep.mubr.f32.mxu1 %v162_v42  ;;  %v183_v45 = vand.u32 4294901760, %v182_v43 }
  0x11   :  { %739 = vmatprep.mubr.f32.mxu0 %v861_v14  ;;  %745 = vmatprep.subr.mxu0 %v73_v28 }
  0x12   :  { %713 = vmatprep.subr.mxu1 %v183_v45 }
  0x13   :  { %711 = vmatmul.mubr.f32.gmra.mrb[2].mxu1 %v172_v44 }
  0x14   :  { %714 = vmatpush3.msra.mxu1 %v183_v45  ;;  %740 = vmatmul.mubr.f32.vlgmr.msra.gmra.mrb[0].mxu0 %v863_v15 }
  0x15   :  { %715 = vmatprep.mubr.f32.mxu1 %v861_v14  ;;  %742 = vmatprep.mubr.f32.mxu0 %v868_v18 }
  0x16   :  { %721 = vmatprep.subr.mxu1 %v180_v36  ;;  %746 = vmatpush3.msra.mxu0 %v73_v28 }
  0x17   :  { %716 = vmatmul.mubr.f32.vlgmr.msra.gmra.mrb[0].mxu1 %v863_v15 }
  0x18   :  { %743 = vmatmul.mubr.f32.gmra.mrb[2].mxu0 %v168_v23  ;;  %718 = vmatprep.mubr.f32.mxu1 %v868_v18 }
  0x19   :  { %722 = vmatpush3.msra.mxu1 %v180_v36  ;;  %747 = vmatprep.mubr.f32.mxu0 %v861_v14 }
  0x1b   :  { %719 = vmatmul.mubr.f32.gmra.mrb[2].mxu1 %v168_v23 }
  0x1c   :  { %748 = vmatmul.mubr.f32.vlgmr.msra.gmra.mrb[0].mxu0 %v863_v15  ;;  %723 = vmatprep.mubr.f32.mxu1 %v139_v21 }
  0x1d   :  { %750 = vmatprep.mubr.f32.mxu0 %v868_v18 }
  0x1f   :  { %724 = vmatmul.mubr.f32.vlgmr.msra.gmra.mrb[0].mxu1 %v149_v22 }
  0x20   :  { %751 = vmatmul.mubr.f32.gmra.mrb[2].mxu0 %v168_v23  ;;  %726 = vmatprep.mubr.f32.mxu1 %v159_v27 }
  0x23   :  { %727 = vmatmul.mubr.f32.gmra.mrb[2].mxu1 %v169_v31 }
  0x83   :  { %v42_v46 = vpop.permute.xlu0 %41  ;;  %v52_v48 = vpop.permute.xlu1 %51 }
  0x87   :  { %v47_v50 = vpop.permute.xlu0 %46  ;;  %v57_v59 = vpop.permute.xlu1 %56 }
  0xef   :  { %v749_v47 = vpop.f32.mrb[0].mxu0 }
  0xf0   :  { %v625_v49 = vpop.f32.mrb[1].mxu0 }
  0xf2   :  { %v725_v51 = vpop.f32.mrb[0].mxu1 }
  0xf3   :  { %v753_v52 = vadd.f32 %v725_v51, %v47_v50  ;;  %v342_v53 = vpop.f32.mrb[1].mxu1  ;;  %v752_v54 = vpop.f32.mrb[2].mxu0 }
  0xf4   :  { %v755_v55 = vadd.f32 %v342_v53, %v42_v46  ;;  %v637_v56 = vpop.f32.mrb[3].mxu0 }
  0xf5   :  { %v754_v57 = vadd.f32 %v753_v52, %v749_v47 }
  0xf6   :  { %v756_v58 = vadd.f32 %v755_v55, %v625_v49  ;;  %v728_v60 = vpop.f32.mrb[2].mxu1 }
  0xf7   :  { %v649_v61 = vmul.f32 1.442695, %v754_v57  ;;  %v757_v62 = vadd.f32 %v728_v60, %v57_v59  ;;  %v356_v63 = vpop.f32.mrb[3].mxu1 }
  0xf8   :  { %v647_v0 = vmul.f32 1.442695, %v756_v58  ;;  %v759_v1 = vadd.f32 %v356_v63, %v52_v48 }
  0xf9   :  { %783 = vpow2.f32 %v649_v61  ;;  %v758_v2 = vadd.f32 %v757_v62, %v752_v54 }
  0xfa   :  { %785 = vpow2.f32 %v647_v0  ;;  %v760_v3 = vadd.f32 %v759_v1, %v637_v56 }
  0xfb   :  { %v653_v4 = vmul.f32 1.442695, %v758_v2 }
  0xfc   :  { %v651_v5 = vmul.f32 1.442695, %v760_v3 }
  0xfd   :  { %787 = vpow2.f32 %v653_v4 }
  0xfe   :  { %789 = vpow2.f32 %v651_v5 }
 0x103   :  { %v784_v6 = vpop.eup %783 }
 0x104   :  { %v786_v7 = vpop.eup %785  ;;  %656 = vst [vmem:[#allocation2 + $0x8] sm:$0xff] %v784_v6 }
 0x105   :  { %655 = vst [vmem:[#allocation2] sm:$0xff] %v786_v7 }
 0x107   :  { %v788_v8 = vpop.eup %787 }
 0x108   :  { %v790_v9 = vpop.eup %789  ;;  %658 = vst [vmem:[#allocation2 + $0x18] sm:$0x1] %v788_v8 }
 0x109   :  { %657 = vst [vmem:[#allocation2 + $0x10] sm:$0xff] %v790_v9 }
 0x10a   :  { %802 = shalt.err (!%p799_p4)
}
 0x10b   :  { %s803_s5 = scalar_lea.hbm %s906_s3, 512 }
 0x10c   :  { %p804_p5 = scmp.ne.s32.totalorder %s906_s3, %s803_s5  ;;  %p807_p6 = scmp.lt.u32.totalorder %s803_s5, %s906_s3 }
 0x10e   :  { %p809_p7 = pnand %p807_p6, %p804_p5 }
 0x110   :  { %812 = shalt.err (!%p809_p7)
}
 0x111   :  { %s817_s10 = smov 128   ;;  %s818_s11 = smov 8  }
 0x112   :  { %670 = dma.vmem_to_hbm [thread:$0]  %s665_s28, 512, %s906_s3, [#allocation3], %s817_s10, %s817_s10, %s818_s11  }
 0x113   :  { %813 = dma.done.wait [#allocation3], 512  }
 0x114   :  { %814 = vsyncadd [#allocation3], 4294966784 }
 0x115   :  { %674 = vsyncpa [#allocation3], 1 }

</bundles_post_ra>
